<compile_context>
chip_gen: v6e
topology: v6e:2x2x1
jax: 0.10.0
libtpu: 0.0.40
codegen_flags: <defaults>
</compile_context>

<pallas_src>
import math

import jax
import jax.numpy as jnp
from jax.experimental import pallas as pl
from jax.experimental.pallas import tpu as pltpu


def _round_up(a, b):
    return ((a + b - 1) // b) * b


def _cdiv(a, b):
    return (a + b - 1) // b


def _vmem_budget_bytes():
    """Usable per-core VMEM: physical capacity minus headroom for compiler scratch."""
    cap = 64 * 2**20  # conservative fallback (v7x per-core VMEM)
    try:
        info = pltpu.get_tpu_info()
        for attr in ("vmem_capacity_bytes", "vmem_bytes", "vmem_size_bytes"):
            v = getattr(info, attr, None)
            if v:
                cap = int(v)
                break
    except Exception:
        pass
    # Reserve ~12.5% (min 8 MiB) so internal scratch / erf polynomials never spill.
    return cap - max(8 * 2**20, cap // 8)


_VMEM_BUDGET = _vmem_budget_bytes()
_SQRT_HALF = 1.0 / math.sqrt(2.0)


def _gelu_f32(h):
    # Exact (erf-form) GELU in f32 — matches PyTorch's default nn.GELU().
    return 0.5 * h * (1.0 + jax.lax.erf(h * _SQRT_HALF))


def _ffn_kernel_inplace(x_ref, w1_ref, b1_ref, w2_ref, b2_ref, o_ref):
    """f32 output path: accumulate directly into the resident output block."""
    j = pl.program_id(1)
    x = x_ref[...]
    h = jnp.dot(x, w1_ref[...], preferred_element_type=jnp.float32) + b1_ref[...]
    g = _gelu_f32(h)
    # Dropout(p=0.0) is the identity.
    # TODO(synk): training-mode dropout (p > 0) would use pltpu.prng_seed/prng_random_bits.
    part = jnp.dot(g.astype(x.dtype), w2_ref[...], preferred_element_type=jnp.float32)

    @pl.when(j == 0)
    def _():
        o_ref[...] = part + b2_ref[...]

    @pl.when(j != 0)
    def _():
        o_ref[...] += part


def _ffn_kernel_acc(x_ref, w1_ref, b1_ref, w2_ref, b2_ref, o_ref, acc_ref):
    """Non-f32 output path: f32 VMEM accumulator, cast + store on the last chunk."""
    j = pl.program_id(1)
    x = x_ref[...]
    h = jnp.dot(x, w1_ref[...], preferred_element_type=jnp.float32) + b1_ref[...]
    g = _gelu_f32(h)
    part = jnp.dot(g.astype(x.dtype), w2_ref[...], preferred_element_type=jnp.float32)

    @pl.when(j == 0)
    def _():
        acc_ref[...] = part + b2_ref[...]

    @pl.when(j != 0)
    def _():
        acc_ref[...] += part

    @pl.when(j == pl.num_programs(1) - 1)
    def _():
        o_ref[...] = acc_ref[...].astype(o_ref.dtype)


class PallasFeedForward:
    """FeedForward with weights padded/cast once at construction (not per call)."""

    def __init__(self, w1, b1, w2, b2, *, compute_dtype=jnp.bfloat16, th=512):
        D, H = w1.shape
        assert w2.shape == (H, D) and b1.shape == (H,) and b2.shape == (D,)
        self.D, self.H = D, H
        self.compute_dtype = jnp.dtype(compute_dtype)

        # Lane-dense, (8,128)-aligned padding.  Prefer 256-wide H chunks so v6e/v7x
        # MXU panels (2x256x256) are fully utilized; fall back to 128 for tiny H.
        align = 256 if H >= 256 else 128
        self.Dp = _round_up(D, 128)
        self.th_blk = int(min(_round_up(th, align), _round_up(H, align)))
        self.Hp = _round_up(H, self.th_blk)

        cd = self.compute_dtype
        self.w1p = jnp.pad(jnp.asarray(w1, cd), ((0, self.Dp - D), (0, self.Hp - H)))
        self.b1p = jnp.pad(jnp.asarray(b1, jnp.float32), (0, self.Hp - H)).reshape(1, self.Hp)
        self.w2p = jnp.pad(jnp.asarray(w2, cd), ((0, self.Hp - H), (0, self.Dp - D)))
        self.b2p = jnp.pad(jnp.asarray(b2, jnp.float32), (0, self.Dp - D)).reshape(1, self.Dp)

    # ---- tile-size / VMEM planning -------------------------------------------------
    def _vmem_need(self, tm, out_itemsize, use_acc):
        c = self.compute_dtype.itemsize
        th_blk, Dp = self.th_blk, self.Dp
        num_h = self.Hp // th_blk
        wbufs = 1 if num_h == 1 else 2
        return (
            2 * tm * Dp * c                        # x tiles (double-buffered)
            + 2 * tm * Dp * out_itemsize           # out tiles (double-buffered)
            + wbufs * 2 * th_blk * Dp * c          # W1 + W2 chunk buffers
            + wbufs * 8 * th_blk * 4 + 8 * Dp * 4  # biases (sublane-padded)
            + (tm * Dp * 4 if use_acc else 0)      # f32 accumulator scratch
            + 2 * tm * th_blk * 4                  # h / GELU intermediates
        )

    def _pick_tm(self, M, out_itemsize, use_acc):
        # Weight-chunk traffic intensity ~ tm FLOP/byte, so tm scales with VMEM:
        # 1024 on 128 MiB chips (v5e/v6e), 512 on v7x (64 MiB per core).
        tm = 1024 if _VMEM_BUDGET >= 96 * 2**20 else 512
        tm = min(tm, _round_up(M, 8))
        # Small-M: split into >= 2 tiles so both v7x TensorCores get work.
        if 8 < M <= tm:
            tm = max(8, _round_up(_cdiv(M, 2), 8))
        # Shrink tm (last resort) until the tile footprint fits the VMEM budget.
        while tm > 8 and self._vmem_need(tm, out_itemsize, use_acc) > _VMEM_BUDGET:
            tm = max(8, _round_up(tm // 2, 8))
        return tm

    # ---- forward --------------------------------------------------------------------
    def __call__(self, x, *, tm=None):
        orig_dtype = x.dtype
        lead, D = x.shape[:-1], x.shape[-1]
        assert D == self.D, f"expected last dim {self.D}, got {D}"
        M = 1
        for s in lead:
            M *= s

        out_itemsize = jnp.dtype(orig_dtype).itemsize
        use_inplace = jnp.dtype(orig_dtype) == jnp.float32
        use_acc = not use_inplace

        if tm is None:
            tm = self._pick_tm(M, out_itemsize, use_acc)
        tm = int(min(tm, _round_up(M, 8)))
        Mp = _round_up(M, tm)
        Dp, Hp, th_blk = self.Dp, self.Hp, self.th_blk

        x2d = x.reshape(M, D).astype(self.compute_dtype)
        if (Mp, Dp) != (M, D):
            x2d = jnp.pad(x2d, ((0, Mp - M), (0, Dp - D)))

        grid = (Mp // tm, Hp // th_blk)
        num_h = grid[1]
        # Blocks whose grid index never changes only need a single VMEM buffer.
        w_mode = pl.Buffered(1) if num_h == 1 else pl.Buffered(2)

        vmem_need = self._vmem_need(tm, out_itemsize, use_acc)
        vmem_limit = int(min(max(vmem_need * 5 // 4, 32 * 2**20), _VMEM_BUDGET))

        c_bytes = self.compute_dtype.itemsize
        cost = pl.CostEstimate(
            flops=4 * Mp * Dp * Hp,                       # two matmuls
            transcendentals=Mp * Hp,                      # erf
            bytes_accessed=(Mp * Dp * (c_bytes + out_itemsize)       # x in + out
                            + grid[0] * 2 * Dp * Hp * c_bytes        # weights re-streamed per M-tile
                            + 4 * (Hp + Dp)),                        # biases
        )

        kernel = _ffn_kernel_inplace if use_inplace else _ffn_kernel_acc
        scratch = () if use_inplace else (pltpu.VMEM((tm, Dp), jnp.float32),)

        out2d = pl.pallas_call(
            kernel,
            out_shape=jax.ShapeDtypeStruct((Mp, Dp), orig_dtype),
            grid_spec=pltpu.PrefetchScalarGridSpec(
                num_scalar_prefetch=0,
                grid=grid,
                in_specs=[
                    pl.BlockSpec((tm, Dp), lambda i, j: (i, 0)),            # x tile (resident over j)
                    pl.BlockSpec((Dp, th_blk), lambda i, j: (0, j),
                                 pipeline_mode=w_mode),                     # W1 chunk
                    pl.BlockSpec((1, th_blk), lambda i, j: (0, j),
                                 pipeline_mode=w_mode),                     # b1 chunk
                    pl.BlockSpec((th_blk, Dp), lambda i, j: (j, 0),
                                 pipeline_mode=w_mode),                     # W2 chunk
                    pl.BlockSpec((1, Dp), lambda i, j: (0, 0),
                                 pipeline_mode=pl.Buffered(1)),             # b2 (resident)
                ],
                out_specs=pl.BlockSpec((tm, Dp), lambda i, j: (i, 0)),
                scratch_shapes=scratch,
            ),
            compiler_params=pltpu.CompilerParams(
                dimension_semantics=("parallel", "arbitrary"),
                vmem_limit_bytes=vmem_limit,
            ),
            cost_estimate=cost,
        )(x2d, self.w1p, self.b1p, self.w2p, self.b2p)

        if (Mp, Dp) != (M, D):
            out2d = out2d[:M, :D]
        return out2d.reshape(*lead, D)


def feed_forward(x, w1, b1, w2, b2, *, compute_dtype=jnp.bfloat16, tm=None, th=512):
    """One-shot convenience wrapper. x: [..., D]; w1: [D, H]; b1: [H]; w2: [H, D]; b2: [D]."""
    return PallasFeedForward(w1, b1, w2, b2, compute_dtype=compute_dtype, th=th)(x, tm=tm)


# ----------------------------- reference + tests ------------------------------------
def _ref_feed_forward(x, w1, b1, w2, b2):
    h = jnp.einsum("bsd,dh->bsh", x, w1) + b1
    g = 0.5 * h * (1.0 + jax.lax.erf(h / jnp.sqrt(2.0)))
    return jnp.einsum("bsh,hd->bsd", g, w2) + b2


def _make_case(key, B, S, D, mult):
    H = D * mult
    kx, kw1, kb1, kw2, kb2 = jax.random.split(key, 5)
    x = jax.random.normal(kx, (B, S, D), dtype=jnp.float32)
    # Mirror nn.Linear's U(-1/sqrt(fan_in), 1/sqrt(fan_in)) init.
    lim1 = 1.0 / math.sqrt(D)
    lim2 = 1.0 / math.sqrt(H)
    w1 = jax.random.uniform(kw1, (D, H), minval=-lim1, maxval=lim1, dtype=jnp.float32)
    b1 = jax.random.uniform(kb1, (H,), minval=-lim1, maxval=lim1, dtype=jnp.float32)
    w2 = jax.random.uniform(kw2, (H, D), minval=-lim2, maxval=lim2, dtype=jnp.float32)
    b2 = jax.random.uniform(kb2, (D,), minval=-lim2, maxval=lim2, dtype=jnp.float32)
    return x, w1, b1, w2, b2


if __name__ == "__main__":
    # Case 1: module-sized shapes (dim=32, mult=4 -> hidden=128), f32 MXU operands.
    x, w1, b1, w2, b2 = _make_case(jax.random.PRNGKey(0), B=2, S=8, D=32, mult=4)
    ref = _ref_feed_forward(x, w1, b1, w2, b2)
    out = jax.block_until_ready(
        feed_forward(x, w1, b1, w2, b2, compute_dtype=jnp.float32))
    assert out.shape == x.shape and out.dtype == x.dtype
    assert jnp.allclose(out, ref, atol=1e-4, rtol=1e-4), "f32 mismatch vs reference"

    # Case 2: same shapes, default bf16 MXU operands (f32 accumulation) - looser tol.
    out_bf16 = jax.block_until_ready(feed_forward(x, w1, b1, w2, b2))
    assert out_bf16.dtype == x.dtype
    assert jnp.allclose(out_bf16, ref, atol=5e-2, rtol=5e-2), "bf16-compute mismatch"

    # Case 3: class API (weights padded/cast once), M padding (74 -> 2 tiles) and
    # H-chunked accumulation (H=512, th=256 -> 2 chunks) with f32 compute.
    x3, w13, b13, w23, b23 = _make_case(jax.random.PRNGKey(1), B=2, S=37, D=64, mult=8)
    ffn3 = PallasFeedForward(w13, b13, w23, b23, compute_dtype=jnp.float32, th=256)
    out3 = jax.block_until_ready(ffn3(x3))
    ref3 = _ref_feed_forward(x3, w13, b13, w23, b23)
    assert out3.shape == x3.shape
    assert jnp.allclose(out3, ref3, atol=1e-4, rtol=1e-4), "chunked mismatch vs reference"
    # Reuse the same prepared weights for a second (smaller) batch shape.
    out3b = jax.block_until_ready(ffn3(x3[:, :5]))
    assert jnp.allclose(out3b, ref3[:, :5], atol=1e-4, rtol=1e-4), "reuse mismatch"

    # Case 4: bf16 inputs/outputs (exercises the f32-scratch accumulator kernel).
    x4 = x.astype(jnp.bfloat16)
    out4 = jax.block_until_ready(feed_forward(x4, w1, b1, w2, b2))
    assert out4.dtype == jnp.bfloat16 and out4.shape == x4.shape
    assert jnp.allclose(out4.astype(jnp.float32), ref, atol=7e-2, rtol=7e-2), "bf16 io mismatch"

    print("KERNEL_OK")
</pallas_src>

<mosaic_0001>
module attributes {stable_mosaic.version = 11 : i64} {
  func.func @_ffn_kernel_inplace(%arg0: i32, %arg1: i32, %arg2: memref<8x128xf32, #tpu.memory_space<vmem>>, %arg3: memref<128x128xf32, #tpu.memory_space<vmem>>, %arg4: memref<1x128xf32, #tpu.memory_space<vmem>>, %arg5: memref<128x128xf32, #tpu.memory_space<vmem>>, %arg6: memref<1x128xf32, #tpu.memory_space<vmem>>, %arg7: memref<8x128xf32, #tpu.memory_space<vmem>>) attributes {dimension_semantics = [#tpu.dimension_semantics<parallel>, #tpu.dimension_semantics<arbitrary>], iteration_bounds = array<i64: 2, 1>, scalar_prefetch = 0 : i64, scratch_operands = 0 : i64, tpu.core_type = #tpu.core_type<tc>, window_params = [{transform_indices = @transform_0, window_bounds = array<i64: 8, 128>}, {pipeline_mode = #tpu.pipeline_mode<synchronous>, transform_indices = @transform_1, window_bounds = array<i64: 128, 128>}, {pipeline_mode = #tpu.pipeline_mode<synchronous>, transform_indices = @transform_2, window_bounds = array<i64: 1, 128>}, {pipeline_mode = #tpu.pipeline_mode<synchronous>, transform_indices = @transform_3, window_bounds = array<i64: 128, 128>}, {pipeline_mode = #tpu.pipeline_mode<synchronous>, transform_indices = @transform_4, window_bounds = array<i64: 1, 128>}, {transform_indices = @transform_5, window_bounds = array<i64: 8, 128>}]} {
    %c0 = arith.constant 0 : index
    %c0_0 = arith.constant 0 : index
    %0 = vector.load %arg2[%c0, %c0_0] : memref<8x128xf32, #tpu.memory_space<vmem>>, vector<8x128xf32>
    %c0_1 = arith.constant 0 : index
    %c0_2 = arith.constant 0 : index
    %1 = vector.load %arg3[%c0_1, %c0_2] : memref<128x128xf32, #tpu.memory_space<vmem>>, vector<128x128xf32>
    %cst = arith.constant dense<0.000000e+00> : vector<8x128xf32>
    %2 = tpu.matmul %0, %1, %cst {dimension_numbers = #tpu.dot_dimension_numbers<[1], [0], [0], [1], [0, 0, 1, 1], [], []>} : vector<8x128xf32>, vector<128x128xf32>, vector<8x128xf32> -> vector<8x128xf32>
    %c0_3 = arith.constant 0 : index
    %c0_4 = arith.constant 0 : index
    %3 = vector.load %arg4[%c0_3, %c0_4] : memref<1x128xf32, #tpu.memory_space<vmem>>, vector<1x128xf32>
    %4 = vector.broadcast %3 : vector<1x128xf32> to vector<8x128xf32>
    %5 = arith.addf %2, %4 : vector<8x128xf32>
    %cst_5 = arith.constant 5.000000e-01 : f32
    %6 = vector.broadcast %cst_5 : f32 to vector<8x128xf32>
    %7 = arith.mulf %6, %5 : vector<8x128xf32>
    %cst_6 = arith.constant 0.707106769 : f32
    %8 = vector.broadcast %cst_6 : f32 to vector<8x128xf32>
    %9 = arith.mulf %5, %8 : vector<8x128xf32>
    %10 = math.erf %9 : vector<8x128xf32>
    %cst_7 = arith.constant 1.000000e+00 : f32
    %11 = vector.broadcast %cst_7 : f32 to vector<8x128xf32>
    %12 = arith.addf %11, %10 : vector<8x128xf32>
    %13 = arith.mulf %7, %12 : vector<8x128xf32>
    %c0_8 = arith.constant 0 : index
    %c0_9 = arith.constant 0 : index
    %14 = vector.load %arg5[%c0_8, %c0_9] : memref<128x128xf32, #tpu.memory_space<vmem>>, vector<128x128xf32>
    %cst_10 = arith.constant dense<0.000000e+00> : vector<8x128xf32>
    %15 = tpu.matmul %13, %14, %cst_10 {dimension_numbers = #tpu.dot_dimension_numbers<[1], [0], [0], [1], [0, 0, 1, 1], [], []>} : vector<8x128xf32>, vector<128x128xf32>, vector<8x128xf32> -> vector<8x128xf32>
    %c0_i32 = arith.constant 0 : i32
    %16 = arith.cmpi eq, %arg1, %c0_i32 : i32
    %17 = arith.extui %16 : i1 to i32
    %c0_i32_11 = arith.constant 0 : i32
    %18 = arith.cmpi ne, %17, %c0_i32_11 : i32
    scf.if %18 {
      %c0_14 = arith.constant 0 : index
      %c0_15 = arith.constant 0 : index
      %22 = vector.load %arg6[%c0_14, %c0_15] : memref<1x128xf32, #tpu.memory_space<vmem>>, vector<1x128xf32>
      %23 = vector.broadcast %22 : vector<1x128xf32> to vector<8x128xf32>
      %24 = arith.addf %15, %23 : vector<8x128xf32>
      %c0_16 = arith.constant 0 : index
      %c0_17 = arith.constant 0 : index
      %25 = vector.load %arg7[%c0_16, %c0_17] : memref<8x128xf32, #tpu.memory_space<vmem>>, vector<8x128xf32>
      tpu.vector_store %arg7[%c0_16, %c0_17], %24 {strides = array<i32>} : memref<8x128xf32, #tpu.memory_space<vmem>>, vector<8x128xf32>,
    } else {
    }
    %c0_i32_12 = arith.constant 0 : i32
    %19 = arith.cmpi ne, %arg1, %c0_i32_12 : i32
    %20 = arith.extui %19 : i1 to i32
    %c0_i32_13 = arith.constant 0 : i32
    %21 = arith.cmpi ne, %20, %c0_i32_13 : i32
    scf.if %21 {
      %c0_14 = arith.constant 0 : index
      %c0_15 = arith.constant 0 : index
      %22 = vector.load %arg7[%c0_14, %c0_15] : memref<8x128xf32, #tpu.memory_space<vmem>>, vector<8x128xf32>
      %23 = arith.addf %22, %15 : vector<8x128xf32>
      %c0_16 = arith.constant 0 : index
      %c0_17 = arith.constant 0 : index
      %24 = vector.load %arg7[%c0_16, %c0_17] : memref<8x128xf32, #tpu.memory_space<vmem>>, vector<8x128xf32>
      tpu.vector_store %arg7[%c0_16, %c0_17], %23 {strides = array<i32>} : memref<8x128xf32, #tpu.memory_space<vmem>>, vector<8x128xf32>,
    } else {
    }
    return
  }
  func.func @transform_0(%arg0: i32, %arg1: i32) -> (i32, i32) {
    %c0_i32 = arith.constant 0 : i32
    %c0_i32_0 = arith.constant 0 : i32
    return %arg0, %c0_i32 : i32, i32
  }
  func.func @transform_1(%arg0: i32, %arg1: i32) -> (i32, i32) {
    %c0_i32 = arith.constant 0 : i32
    %c0_i32_0 = arith.constant 0 : i32
    return %c0_i32, %arg1 : i32, i32
  }
  func.func @transform_2(%arg0: i32, %arg1: i32) -> (i32, i32) {
    %c0_i32 = arith.constant 0 : i32
    %c0_i32_0 = arith.constant 0 : i32
    return %c0_i32, %arg1 : i32, i32
  }
  func.func @transform_3(%arg0: i32, %arg1: i32) -> (i32, i32) {
    %c0_i32 = arith.constant 0 : i32
    %c0_i32_0 = arith.constant 0 : i32
    return %arg1, %c0_i32 : i32, i32
  }
  func.func @transform_4(%arg0: i32, %arg1: i32) -> (i32, i32) {
    %c0_i32 = arith.constant 0 : i32
    %c0_i32_0 = arith.constant 0 : i32
    %c0_i32_1 = arith.constant 0 : i32
    return %c0_i32, %c0_i32_0 : i32, i32
  }
  func.func @transform_5(%arg0: i32, %arg1: i32) -> (i32, i32) {
    %c0_i32 = arith.constant 0 : i32
    %c0_i32_0 = arith.constant 0 : i32
    return %arg0, %c0_i32 : i32, i32
  }
}

</mosaic_0001>

<bundles_post_ra>
// kernel: tpu_custom_call.1
= control target key start
LH: loop header
LB: loop body
LE: loop exit
PB: predicated region body
PF: predicated region fallthrough
CT: control target
= control target key end

     0   :  { %s1287_s0 = inlined_call_operand.hbm [shape: f32[16,128], index: 0, kind: input, shape index: {}]   ;;  %s1288_s1 = inlined_call_operand.hbm [shape: f32[128,128], index: 1, kind: input, shape index: {}]   ;;  %s1289_s2 = inlined_call_operand.vmem [shape: f32[1,128], index: 2, kind: input, shape index: {}]   ;;  %s1290_s3 = inlined_call_operand.hbm [shape: f32[128,128], index: 3, kind: input, shape index: {}]   ;;  %s1291_s4 = inlined_call_operand.vmem [shape: f32[1,128], index: 4, kind: input, shape index: {}]   ;;  %s1292_s5 = inlined_call_operand.hbm [shape: f32[16,128], index: 5, kind: output, shape index: {}]  }
   0x1   :  { %1296 = sst [smem:[#allocation12_spill]] %s1288_s1 }
   0x2   :  { %10 = vsyncpa [#allocation3], 0 }
   0x3   :  { %12 = vsyncpa [#allocation3 + $0x1], 0 }
   0x4   :  { %13 = vsyncpa [#allocation6], 0 }
   0x5   :  { %14 = vsyncpa [#allocation4], 0 }
   0x6   :  { %16 = vsyncpa [#allocation4 + $0x1], 0  ;;  %s1060_s18 = smov 0   ;;  %s1062_s19 = smov 0  }
   0x7   :  { %s1064_s20 = smov 0   ;;  %s1066_s21 = smov 0  }
   0x8   :  { %s1068_s22 = smov 0   ;;  %s1070_s23 = smov 0  }
   0x9 LB: > { %s643_s24 = sadd.s32 4294967295, %s1020_s23   ;;  %s644_s25 = sadd.s32 4294967294, %s1020_s23   ;;  %s1020_s23 = sphi %s1070_s23, %s22_s23   ;;  %s1016_s22 = sphi %s1068_s22, %s1314_s22   ;;  %s1012_s21 = sphi %s1066_s21, %s1313_s21   ;;  %s1008_s20 = sphi %s1064_s20, %s1312_s20   ;;  %s1004_s19 = sphi %s1062_s19, %s1311_s19   ;;  %s1000_s18 = sphi %s1060_s18, %s1310_s18  }
   0xa   : > { %p54_p0 = scmp.ne.s32.totalorder %s1004_s19, %s1000_s18  ;;  %p1094_p1 = scmp.eq.s32.totalorder %s643_s24, 0 }
   0xb   : > { %p1098_p2 = scmp.eq.s32.totalorder %s643_s24, 1  ;;  %p183_p3 = scmp.eq.s32.totalorder %s644_s25, 1 }
   0xc   : > { %s1297_s26 = scalar_select %p1094_p1, 1, 0 }
   0xd   : > { %p1104_p4 = por %p1094_p1, %p54_p0  ;;  %p645_p5 = scmp.ge.s32.totalorder %s1020_s23, 1 }
   0xe   : > { %p1109_p6 = por %p183_p3, %p54_p0  ;;  %p190_p7 = scmp.lt.s32.totalorder %s1020_s23, 3 }
   0xf   : > { %s1299_s28 = scalar_select %p1104_p4, 1, 0 }
  0x10   : > { %s1300_s29 = scalar_select %p1109_p6, 1, 0 }
  0x11   : > { %p1114_p8 = pnand %p645_p5, %p190_p7  ;;  %s1022_s6 = smov [#allocation5]  }
  0x12   : > { %s204_s7 = sshll.u32 %s1022_s6, 4  ;;  %s1023_s9 = smov [#allocation7]   ;;  %s205_s7 = int_to_ptr.vmem [resolvable:$true] %s204_s7 }
  0x13   : > { %p779_p9 = pneg %p1114_p8  ;;  %s226_s10 = sshll.u32 %s1023_s9, 4  ;;  %s227_s10 = int_to_ptr.vmem [resolvable:$true] %s226_s10 }
  0x14   : > { %s867_s11 = scalar_lea.vmem %s205_s7, 2048  ;;  %p875_p5 = scmp.lt.s32.totalorder %s205_s7, %s205_s7 }
  0x15   : > { %p1123_p11 = pnand %p779_p9, %p1094_p1  ;;  %p868_p13 = scmp.ne.s32.totalorder %s205_s7, %s867_s11 }
  0x16   : > { %p876_p7 = scmp.lt.s32.totalorder %s867_s11, %s867_s11 }
  0x17   : > { %p858_p12 = pneg %p1123_p11 }
  0x18   : > { %p877_p10 = por %p876_p7, %p875_p5 }
  0x19   : > { %p870_p0 = pnand %p868_p13, %p858_p12 }
  0x1b   : > { %p871_p3 = pneg %p870_p0 }
  0x1d   : > { %p878_p9 = pnand %p877_p10, %p871_p3 }
  0x1f   : > { %881 = shalt.err (!%p878_p9)
}
  0x20   : > { %s1024_s12 = smov 128   ;;  %s1025_s13 = smov 8  }
  0x21   : > { %s1303_s1 = sld [smem:[#allocation12_spill]]  ;;  %s893_s16 = scalar_lea.vmem %s227_s10, 2048 }
  0x22   : > { %p894_p6 = scmp.ne.s32.totalorder %s227_s10, %s893_s16  ;;  %p901_p1 = scmp.lt.s32.totalorder %s227_s10, %s227_s10 }
  0x23   : > { %p902_p4 = scmp.lt.s32.totalorder %s893_s16, %s893_s16 }
  0x24   : > { %p896_p13 = pnand %p894_p6, %p858_p12 }
  0x25   : > { %p903_p5 = por %p902_p4, %p901_p1 }
  0x26   : > { %p897_p0 = pneg %p896_p13 }
  0x27   : > { %782 = dma.hbm_to_vmem [thread:$0]  (!%p1123_p11), %s1303_s1, 2048, %s205_s7, [#allocation6], %s1024_s12, %s1024_s12, %s1025_s13  }
  0x28   : > { %p904_p10 = pnand %p903_p5, %p897_p0 }
  0x2a   : > { %907 = shalt.err (!%p904_p10)
}
  0x2b   : > { %785 = dma.hbm_to_vmem [thread:$0]  (!%p1123_p11), %s1290_s3, 2048, %s227_s10, [#allocation6], %s1024_s12, %s1024_s12, %s1025_s13  }
  0x2c   : > { %s34_s25 = sadd.s32 1, %s1016_s22  ;;  %s41_s6 = sadd.s32 1, %s1008_s20 }
  0x2d   : > { %p36_p1 = scmp.ge.s32.totalorder %s34_s25, 2  ;;  %p48_p4 = scmp.ne.s32.totalorder %s1008_s20, %s1004_s19 }
  0x2e   : > { %p49_p6 = scmp.eq.s32.totalorder %s1020_s23, 0  ;;  %p796_p12 = scmp.lt.s32.totalorder %s1020_s23, 2 }
  0x2f   : > { %s1316_s25 = smov (%p36_p1, %s34_s25), 0  ;;  %p1155_p7 = por %p1098_p2, %p48_p4 }
  0x30   : > { %p50_p3 = por %p49_p6, %p48_p4  ;;  %s38_s8 = ssub.s32 %s1016_s22, %s1316_s25 }
  0x31   : > { %s243_s9 = sand.u32 1, %s1008_s20   ;;  %p39_p9 = scmp.eq.s32.totalorder %s38_s8, 0 }
  0x32   : > { %s650_s10 = sshll.u32 %s243_s9, 3  ;;  %s651_s11 = sshll.u32 %s1016_s22, 7 }
  0x33   : > { %s1164_s12 = scalar_select %p39_p9, %s1008_s20, %s41_s6  }
  0x34   : > { %s252_s15 = scalar_lea.hbm %s1287_s0, %s651_s11  ;;  %s247_s16 = scalar_lea.vmem [#allocation2], %s650_s10 }
  0x35   : > { %s254_s17 = sshll.u32 %s247_s16, 4  ;;  %p1171_p11 = pnand %p796_p12, %p50_p3  ;;  %s255_s17 = int_to_ptr.vmem [resolvable:$true] %s254_s17 }
  0x36   : > { %s244_s24 = scalar_lea.sflag [#allocation3], %s243_s9  ;;  %s921_s8 = scalar_lea.vmem %s255_s17, 128 }
  0x37   : > { %p910_p2 = pneg %p1171_p11  ;;  %p922_p13 = scmp.ne.s32.totalorder %s255_s17, %s921_s8 }
  0x38   : > { %s1026_s6 = smov [#allocation2]  }
  0x39   : > { %p924_p0 = pnand %p922_p13, %p910_p2  ;;  %s926_s1 = sshll.u32 %s1026_s6, 4  ;;  %s927_s1 = int_to_ptr.vmem [resolvable:$false] %s926_s1 }
  0x3a   : > { %s928_s11 = scalar_lea.vmem %s927_s1, 256  ;;  %p929_p10 = scmp.lt.s32.totalorder %s255_s17, %s927_s1 }
  0x3b   : > { %p925_p5 = pneg %p924_p0  ;;  %p930_p1 = scmp.lt.s32.totalorder %s928_s11, %s921_s8 }
  0x3d   : > { %p931_p4 = por %p930_p1, %p929_p10 }
  0x3f   : > { %p932_p6 = pnand %p931_p4, %p925_p5 }
  0x41   : > { %935 = shalt.err (!%p932_p6)
}
  0x42   : > { %789 = dma.hbm_to_vmem [thread:$0]  (!%p1171_p11), %s252_s15, 128, %s255_s17, %s244_s24  }
  0x43   : > { %263 = sbr.rel (%p1114_p8) target bundleno = 533 (0x215), region = 40  ;;  %s1182_s9 = sand.u32 (!%p1114_p8), 1, %s1004_s19  }
  0x44   : > { %s653_s10 = sshll.u32 (!%p1114_p8), %s1182_s9, 3  ;;  %s266_s13 = scalar_lea.sflag (!%p1114_p8), [#allocation3], %s1182_s9 }
  0x45   : > { %s1188_s1 = scalar_lea.vmem (!%p1114_p8), [#allocation2], %s653_s10  ;;  %p1306_p12 = scmp.ne.s32.totalorder (!%p1114_p8), %s1299_s28, 0 }
  0x48   : > { %987 = dma.done.wait (%p1306_p12), %s266_s13, 128  }
  0x49   : > { %989 = vsyncadd (%p1306_p12), %s266_s13, 4294967168  ;;  %p1307_p3 = scmp.ne.s32.totalorder %s1297_s26, 0 }
  0x4b   : > { %991 = dma.done.wait (%p1307_p3), [#allocation6], 4096  }
  0x4c   : > { %993 = vsyncadd (%p1307_p3), [#allocation6], 4294963200  ;;  %v1027_v0 = vmov 0.0   ;;  %vm1028_vm0 = vmmov 0   ;;  %v327_v1 = vld [vmem:[#allocation5 + $0x78] sm:$0xff]  ;;  %v326_v2 = vld [vmem:[#allocation5 + $0x70] sm:$0xff] }
  0x4d   : > { %697 = vmatprep.subr.mxu0 %v1027_v0  ;;  %729 = vmatprep.mubr.msk.f32.mxu0 %vm1028_vm0, %v1027_v0  ;;  %v325_v3 = vld [vmem:[#allocation5 + $0x68] sm:$0xff]  ;;  %v324_v4 = vld [vmem:[#allocation5 + $0x60] sm:$0xff]  ;;  %v425_v5 = vld [vmem:[#allocation7 + $0x78] sm:$0xff]  ;;  %s660_s15 = sshll.u32 %s1012_s21, 7  ;;  %s306_s16 = scalar_lea.vmem [#allocation8], %s653_s10 }
  0x4e   : > { %732 = vmatprep.subr.mxu1 %v1027_v0  ;;  %764 = vmatprep.mubr.msk.f32.mxu1 %vm1028_vm0, %v1027_v0  ;;  %v323_v6 = vld [vmem:[#allocation5 + $0x58] sm:$0xff]  ;;  %v424_v7 = vld [vmem:[#allocation7 + $0x70] sm:$0xff]  ;;  %v423_v8 = vld [vmem:[#allocation7 + $0x68] sm:$0xff]  ;;  %s530_s17 = sshll.u32 %s306_s16, 4  ;;  %s1245_s8 = scalar_lea.hbm %s1292_s5, %s660_s15  ;;  %s531_s17 = int_to_ptr.vmem [resolvable:$true] %s530_s17 }
  0x4f   : > { %698 = vmatpush3.msra.mxu0 %v327_v1  ;;  %733 = vmatpush3.msra.mxu1 %v425_v5  ;;  %v322_v9 = vld [vmem:[#allocation5 + $0x50] sm:$0xff]  ;;  %v422_v10 = vld [vmem:[#allocation7 + $0x60] sm:$0xff]  ;;  %v321_v11 = vld [vmem:[#allocation5 + $0x48] sm:$0xff]  ;;  %s517_s6 = scalar_lea.sflag [#allocation4], %s1182_s9  ;;  %s936_s11 = scalar_lea.vmem %s531_s17, 128 }
  0x50   : > { %699 = vmatprep.subr.mxu0 %v1027_v0  ;;  %734 = vmatprep.subr.mxu1 %v1027_v0  ;;  %v320_v12 = vld [vmem:[#allocation5 + $0x40] sm:$0xff]  ;;  %v319_v13 = vld [vmem:[#allocation5 + $0x38] sm:$0xff]  ;;  %v318_v14 = vld [vmem:[#allocation5 + $0x30] sm:$0xff]  ;;  %p937_p8 = scmp.ne.s32.totalorder %s531_s17, %s936_s11  ;;  %s1029_s21 = smov [#allocation8]  }
  0x51   : > { %700 = vmatpush3.msra.mxu0 %v326_v2  ;;  %735 = vmatpush3.msra.mxu1 %v424_v7  ;;  %v317_v15 = vld [vmem:[#allocation5 + $0x28] sm:$0xff]  ;;  %v316_v16 = vld [vmem:[#allocation5 + $0x20] sm:$0xff]  ;;  %v315_v17 = vld [vmem:[#allocation5 + $0x18] sm:$0xff]  ;;  %s940_s13 = sshll.u32 %s1029_s21, 4  ;;  %s941_s13 = int_to_ptr.vmem [resolvable:$false] %s940_s13 }
  0x52   : > { %701 = vmatprep.subr.mxu0 %v1027_v0  ;;  %736 = vmatprep.subr.mxu1 %v1027_v0  ;;  %v314_v18 = vld [vmem:[#allocation5 + $0x10] sm:$0xff]  ;;  %v313_v19 = vld [vmem:[#allocation5 + $0x8] sm:$0xff]  ;;  %v312_v20 = vld [vmem:[#allocation5] sm:$0xff]  ;;  %p938_p9 = pnand %p937_p8, %p1155_p7  ;;  %s942_s10 = scalar_lea.vmem %s941_s13, 256 }
  0x53   : > { %702 = vmatpush3.msra.mxu0 %v325_v3  ;;  %737 = vmatpush3.msra.mxu1 %v423_v8  ;;  %v311_v21 = vld [vmem:[%s1188_s1] sm:$0xff]  ;;  %v419_v24 = vld [vmem:[#allocation7 + $0x48] sm:$0xff]  ;;  %v418_v25 = vld [vmem:[#allocation7 + $0x40] sm:$0xff]  ;;  %p943_p2 = scmp.lt.s32.totalorder %s531_s17, %s941_s13  ;;  %p944_p13 = scmp.lt.s32.totalorder %s942_s10, %s936_s11 }
  0x54   : > { %703 = vmatprep.subr.mxu0 %v1027_v0  ;;  %738 = vmatprep.subr.mxu1 %v1027_v0  ;;  %v421_v22 = vld [vmem:[#allocation7 + $0x58] sm:$0xff]  ;;  %v420_v23 = vld [vmem:[#allocation7 + $0x50] sm:$0xff]  ;;  %v415_v28 = vld [vmem:[#allocation7 + $0x28] sm:$0xff]  ;;  %p939_p11 = pneg %p938_p9 }
  0x55   : > { %704 = vmatpush3.msra.mxu0 %v324_v4  ;;  %739 = vmatpush3.msra.mxu1 %v422_v10  ;;  %v417_v26 = vld [vmem:[#allocation7 + $0x38] sm:$0xff]  ;;  %v416_v27 = vld [vmem:[#allocation7 + $0x30] sm:$0xff]  ;;  %v414_v29 = vld [vmem:[#allocation7 + $0x20] sm:$0xff]  ;;  %p945_p0 = por %p944_p13, %p943_p2 }
  0x56   : > { %705 = vmatprep.subr.mxu0 %v1027_v0  ;;  %740 = vmatprep.subr.mxu1 %v1027_v0  ;;  %v413_v30 = vld [vmem:[#allocation7 + $0x18] sm:$0xff]  ;;  %v412_v31 = vld [vmem:[#allocation7 + $0x10] sm:$0xff]  ;;  %v411_v32 = vld [vmem:[#allocation7 + $0x8] sm:$0xff] }
  0x57   : > { %706 = vmatpush3.msra.mxu0 %v323_v6  ;;  %741 = vmatpush3.msra.mxu1 %v421_v22  ;;  %v410_v33 = vld [vmem:[#allocation7] sm:$0xff]  ;;  %v657_v34 = vld [vmem:[%s1289_s2] ss:$0 sm:$0xff]  ;;  %p946_p5 = pnand %p945_p0, %p939_p11 }
  0x58   : > { %707 = vmatprep.subr.mxu0 %v1027_v0  ;;  %742 = vmatprep.subr.mxu1 %v1027_v0  ;;  %v658_v43 = vld [vmem:[%s1291_s4] ss:$0 sm:$0xff] }
  0x59   : > { %708 = vmatpush3.msra.mxu0 %v322_v9  ;;  %743 = vmatpush3.msra.mxu1 %v420_v23 }
  0x5a   : > { %709 = vmatprep.subr.mxu0 %v1027_v0  ;;  %744 = vmatprep.subr.mxu1 %v1027_v0 }
  0x5b   : > { %710 = vmatpush3.msra.mxu0 %v321_v11  ;;  %745 = vmatpush3.msra.mxu1 %v419_v24 }
  0x5c   : > { %711 = vmatprep.subr.mxu0 %v1027_v0  ;;  %746 = vmatprep.subr.mxu1 %v1027_v0 }
  0x5d   : > { %712 = vmatpush3.msra.mxu0 %v320_v12  ;;  %747 = vmatpush3.msra.mxu1 %v418_v25 }
  0x5e   : > { %713 = vmatprep.subr.mxu0 %v1027_v0  ;;  %748 = vmatprep.subr.mxu1 %v1027_v0 }
  0x5f   : > { %714 = vmatpush3.msra.mxu0 %v319_v13  ;;  %749 = vmatpush3.msra.mxu1 %v417_v26 }
  0x60   : > { %715 = vmatprep.subr.mxu0 %v1027_v0  ;;  %750 = vmatprep.subr.mxu1 %v1027_v0 }
  0x61   : > { %716 = vmatpush3.msra.mxu0 %v318_v14  ;;  %751 = vmatpush3.msra.mxu1 %v416_v27 }
  0x62   : > { %717 = vmatprep.subr.mxu0 %v1027_v0  ;;  %752 = vmatprep.subr.mxu1 %v1027_v0 }
  0x63   : > { %718 = vmatpush3.msra.mxu0 %v317_v15  ;;  %753 = vmatpush3.msra.mxu1 %v415_v28 }
  0x64   : > { %719 = vmatprep.subr.mxu0 %v1027_v0  ;;  %754 = vmatprep.subr.mxu1 %v1027_v0 }
  0x65   : > { %720 = vmatpush3.msra.mxu0 %v316_v16  ;;  %755 = vmatpush3.msra.mxu1 %v414_v29 }
  0x66   : > { %721 = vmatprep.subr.mxu0 %v1027_v0  ;;  %756 = vmatprep.subr.mxu1 %v1027_v0 }
  0x67   : > { %722 = vmatpush3.msra.mxu0 %v315_v17  ;;  %757 = vmatpush3.msra.mxu1 %v413_v30 }
  0x68   : > { %723 = vmatprep.subr.mxu0 %v1027_v0  ;;  %758 = vmatprep.subr.mxu1 %v1027_v0 }
  0x69   : > { %724 = vmatpush3.msra.mxu0 %v314_v18  ;;  %759 = vmatpush3.msra.mxu1 %v412_v31 }
  0x6a   : > { %725 = vmatprep.subr.mxu0 %v1027_v0  ;;  %760 = vmatprep.subr.mxu1 %v1027_v0 }
  0x6b   : > { %726 = vmatpush3.msra.mxu0 %v313_v19  ;;  %761 = vmatpush3.msra.mxu1 %v411_v32 }
  0x6c   : > { %727 = vmatprep.subr.mxu0 %v1027_v0  ;;  %762 = vmatprep.subr.mxu1 %v1027_v0 }
  0x6d   : > { %728 = vmatpush3.msra.mxu0 %v312_v20  ;;  %763 = vmatpush3.msra.mxu1 %v410_v33 }
  0x6e   : > { %730 = vmatmul.mubr.f32.vlgmr.msra.gmra.mxu0 %v311_v21 }
 0x12e   : > { %v401_v35 = vpop.f32.mrf.mxu0 }
 0x12f   : > { %v402_v36 = vadd.f32 %v657_v34, %v401_v35 }
 0x130   : > { %v731_v37 = vpop.f32.mrf.mxu0 }
 0x131   : > { %v406_v38 = vmul.f32 0.70710677, %v402_v36  ;;  %v405_v40 = vmul.f32 0.5, %v402_v36 }
 0x133   : > { %854 = verf.f32 %v406_v38 }
 0x140   : > { %v855_v39 = vpop.eup %854 }
 0x141   : > { %v408_v41 = vadd.f32 1.0, %v855_v39 }
 0x143   : > { %v409_v42 = vmul.f32 %v408_v41, %v405_v40 }
 0x145   : > { %765 = vmatmul.mubr.f32.vlgmr.msra.gmra.mxu1 %v409_v42 }
 0x205   : > { %v492_v44 = vpop.f32.mrf.mxu1 }
 0x206   : > { %v507_v45 = vadd.f32 %v658_v43, %v492_v44 }
 0x207   : > { %v766_v46 = vpop.f32.mrf.mxu1 }
 0x208   : > { %508 = vst [vmem:[%s306_s16] sm:$0xff] %v507_v45 }
 0x209   : > { %949 = shalt.err (!%p946_p5)
}
 0x20a   : > { %s950_s1 = scalar_lea.hbm %s1245_s8, 128  ;;  %s954_s28 = scalar_lea.hbm %s1292_s5, 256 }
 0x20b   : > { %p951_p10 = scmp.ne.s32.totalorder %s1245_s8, %s950_s1  ;;  %p955_p6 = scmp.lt.s32.totalorder %s1245_s8, %s1292_s5 }
 0x20c   : > { %p956_p12 = scmp.lt.s32.totalorder %s954_s28, %s950_s1 }
 0x20d   : > { %p952_p1 = pnand %p951_p10, %p1155_p7 }
 0x20e   : > { %p957_p3 = por %p956_p12, %p955_p6 }
 0x20f   : > { %p953_p4 = pneg %p952_p1 }
 0x211   : > { %p958_p8 = pnand %p957_p3, %p953_p4 }
 0x213   : > { %961 = shalt.err (!%p958_p8)
}
 0x214   : > { %777 = dma.vmem_to_hbm [thread:$0]  (%p1155_p7), %s531_s17, 128, %s1245_s8, %s517_s6  }
 0x215 PF: > { %s542_s15 = sand.u32 1, %s1000_s18   ;;  %p1308_p9 = scmp.ne.s32.totalorder %s1300_s29, 0 }
 0x216   : > { %p1309_p11 = scmp.ge.s32.totalorder %s1020_s23, 2  ;;  %s543_s16 = scalar_lea.sflag [#allocation4], %s542_s15 }
 0x218   : > { %p791_p2 = pnand %p1309_p11, %p1308_p9 }
 0x21a   : > { %p792_p13 = pneg %p791_p2 }
 0x21c   : > { %995 = dma.done.wait (%p792_p13), %s543_s16, 128  }
 0x21d   : > { %997 = vsyncadd (%p792_p13), %s543_s16, 4294967168  ;;  %s22_s23 = sadd.s32 1, %s1020_s23   ;;  %s1310_s18 = smov %s1004_s19 }
 0x21e   : > { %p19_p0 = scmp.ge.s32.totalorder %s22_s23, 4   ;;  %s1311_s19 = smov %s1008_s20 }
 0x21f   : > { %s1312_s20 = smov %s1164_s12  ;;  %s1313_s21 = smov %s1016_s22 }
 0x220   : > { %s1314_s22 = smov %s1316_s25  ;;  %21 = sbr.rel (!%p19_p0) target bundleno = 9 (0x9), region = 106 }
 0x225   :  { %548 = vsyncpa [#allocation3], 1 }
 0x226   :  { %550 = vsyncpa [#allocation3 + $0x1], 1 }
 0x227   :  { %551 = vsyncpa [#allocation6], 1 }
 0x228   :  { %552 = vsyncpa [#allocation4], 1 }
 0x229   :  { %554 = vsyncpa [#allocation4 + $0x1], 1 }

</bundles_post_ra>
